<compile_context>
chip_gen: v6e
topology: v6e:2x2x1
jax: 0.10.0
libtpu: 0.0.40
codegen_flags: <defaults>
</compile_context>

<pallas_src>
import jax
import jax.numpy as jnp
from jax.experimental import pallas as pl
from jax.experimental.pallas import tpu as pltpu

_MLP_PAD = 128  # hidden width 32 zero-padded to one full lane tile


def _round_up(n, m):
    return ((n + m - 1) // m) * m


def _vmem_capacity_bytes():
    try:
        return int(pltpu.get_tpu_info().vmem_capacity_bytes)
    except Exception:
        return 64 * 1024 * 1024  # conservative (v7x per-core VMEM)


def _epilogue(x, fused, d, w2_ref, b2_ref, wf_ref, wpf_ref, bias_ref, o_ref):
    """Everything after the big fused matmul (all row-independent)."""
    scores = fused[:, :d]                                  # (TB, D)  = x@Wa + ba
    h1 = jnp.maximum(fused[:, d:], 0.0)                    # (TB, 128) ReLU(x@W1+b1) padded

    # self-attention branch: softmax(scores, -1) * x
    m = jnp.max(scores, axis=-1, keepdims=True)
    e = jnp.exp(scores - m)
    inv = pl.reciprocal(jnp.sum(e, axis=-1, keepdims=True), approx=True)
    attn = (e * inv) * x                                   # (TB, D)

    # second MLP layer (padded to 128 lanes; exact because pad cols are zero)
    h2 = jnp.maximum(
        jnp.dot(h1.astype(w2_ref.dtype), w2_ref[...],
                preferred_element_type=jnp.float32) + b2_ref[...], 0.0)   # (TB, 128)

    # fc(32,1) + folded Linear(D,32): VPU multiplies + lane reduces (no MXU)
    logit = (jnp.sum(h2 * wf_ref[...], axis=-1, keepdims=True)
             + jnp.sum(attn * wpf_ref[...], axis=-1, keepdims=True)
             + bias_ref[...])
    o_ref[...] = 1.0 / (1.0 + jnp.exp(-logit))             # sigmoid


def _fwd_kernel(x_ref, wcat_ref, bcat_ref, w2_ref, b2_ref,
                wf_ref, wpf_ref, bias_ref, o_ref):
    """Resident-weight path: one fused MXU pass per batch tile."""
    d = x_ref.shape[-1]
    x = x_ref[...]
    fused = jnp.dot(x.astype(wcat_ref.dtype), wcat_ref[...],
                    preferred_element_type=jnp.float32) + bcat_ref[...]
    _epilogue(x, fused, d, w2_ref, b2_ref, wf_ref, wpf_ref, bias_ref, o_ref)


def _fwd_kernel_kstream(x_ref, wcat_ref, bcat_ref, w2_ref, b2_ref,
                        wf_ref, wpf_ref, bias_ref, o_ref, acc_ref):
    """K-streaming path: w_cat tiled over K, f32 accumulator in VMEM."""
    k = pl.program_id(1)
    nk = pl.num_programs(1)
    tk = wcat_ref.shape[0]

    @pl.when(k == 0)
    def _():
        acc_ref[...] = jnp.zeros_like(acc_ref)

    start = pl.multiple_of(k * tk, 128)
    xk = x_ref[:, pl.ds(start, tk)]
    acc_ref[...] += jnp.dot(xk.astype(wcat_ref.dtype), wcat_ref[...],
                            preferred_element_type=jnp.float32)

    @pl.when(k == nk - 1)
    def _():
        d = x_ref.shape[-1]
        fused = acc_ref[...] + bcat_ref[...]
        _epilogue(x_ref[...], fused, d, w2_ref, b2_ref, wf_ref, wpf_ref,
                  bias_ref, o_ref)


def classification_model_forward(x, params, *, block_b=256,
                                 matmul_dtype=jnp.bfloat16, k_block=None):
    """x: (B, D) float32. params: weights stored (in, out), biases (1, out)."""
    B, D = x.shape
    f32 = jnp.float32
    mm_dtype = f32 if matmul_dtype is None else jnp.dtype(matmul_dtype)

    # ---- host-side weight fusion / padding (once per call, cheap) ----
    w1p = jnp.zeros((D, _MLP_PAD), f32).at[:, :32].set(params["w1"])
    b1p = jnp.zeros((1, _MLP_PAD), f32).at[:, :32].set(params["b1"])
    w_cat = jnp.concatenate([params["wa"], w1p], axis=1).astype(mm_dtype)  # (D, D+128)
    b_cat = jnp.concatenate([params["ba"], b1p], axis=1)                   # (1, D+128)
    w2p = jnp.zeros((_MLP_PAD, _MLP_PAD), f32).at[:32, :32].set(params["w2"]).astype(mm_dtype)
    b2p = jnp.zeros((1, _MLP_PAD), f32).at[:, :32].set(params["b2"])
    wf_row = jnp.zeros((1, _MLP_PAD), f32).at[:, :32].set(params["wf"].reshape(1, -1))
    # Fold Linear(D,32) through fc:  proj@Wf = attn@(Wp@Wf) + bp@Wf
    wpf_row = (params["wp"] @ params["wf"]).reshape(1, D)                  # (1, D) f32
    bias_tot = (params["bp"] @ params["wf"] + params["bf"]).reshape(1, 1)  # (1, 1) f32

    # ---- tiling / VMEM plan ----
    n_fused = D + _MLP_PAD
    w_isz = jnp.dtype(mm_dtype).itemsize
    x_isz = jnp.dtype(x.dtype).itemsize
    cap = _vmem_capacity_bytes()
    budget = max(cap - max(8 * 1024 * 1024, cap // 8), 16 * 1024 * 1024)

    TB = max(8, min(_round_up(block_b, 8), _round_up(B, 8)))

    def _resident_bytes(tb):
        w = D * n_fused * w_isz + _MLP_PAD * _MLP_PAD * w_isz
        small = (n_fused + 3 * _MLP_PAD + D + 1) * 4
        io = 2 * tb * D * x_isz + 2 * tb * 128 * 4
        inter = 5 * tb * n_fused * 4
        return w + small + io + inter

    def _stream_bytes(tb, tk):
        w = 2 * tk * n_fused * w_isz + _MLP_PAD * _MLP_PAD * w_isz
        small = (n_fused + 3 * _MLP_PAD + D + 1) * 4
        io = 2 * tb * D * x_isz + 2 * tb * 128 * 4
        acc = tb * n_fused * 4
        inter = 4 * tb * n_fused * 4
        return w + small + io + acc + inter

    use_stream, tk = False, None
    if k_block is not None and 0 < int(k_block) < D and D % int(k_block) == 0:
        use_stream, tk = True, int(k_block)
    elif _resident_bytes(TB) > budget and D % 128 == 0:
        use_stream = True
        tk = next(t for t in (512, 256, 128) if D % t == 0)

    est_fn = (lambda tb: _stream_bytes(tb, tk)) if use_stream else _resident_bytes
    while TB > 64 and est_fn(TB) > budget:
        TB = max(64, _round_up(TB // 2, 8))
    vmem_limit = int(min(budget, max(est_fn(TB) * 1.3, 16 * 1024 * 1024)))

    grid_b = pl.cdiv(B, TB)  # ragged last tile handled by Pallas (no host pad)
    out_shape = jax.ShapeDtypeStruct((B, 1), jnp.float32)

    def _call(single_buffer_weights):
        w_kw = {"pipeline_mode": pl.Buffered(1)} if single_buffer_weights else {}

        if not use_stream:
            grid = (grid_b,)
            inv = lambda i: (0, 0)
            x_spec = pl.BlockSpec((TB, D), lambda i: (i, 0))
            o_spec = pl.BlockSpec((TB, 1), lambda i: (i, 0))
            wcat_spec = pl.BlockSpec(w_cat.shape, inv, **w_kw)
            kernel, scratch, dims = _fwd_kernel, [], ("parallel",)
        else:
            grid = (grid_b, D // tk)
            inv = lambda i, k: (0, 0)
            x_spec = pl.BlockSpec((TB, D), lambda i, k: (i, 0))
            o_spec = pl.BlockSpec((TB, 1), lambda i, k: (i, 0))
            wcat_spec = pl.BlockSpec((tk, n_fused), lambda i, k: (k, 0))
            kernel = _fwd_kernel_kstream
            scratch = [pltpu.VMEM((TB, n_fused), jnp.float32)]
            dims = ("parallel", "arbitrary")

        other = lambda a: pl.BlockSpec(a.shape, inv, **w_kw)
        in_specs = [x_spec, wcat_spec, other(b_cat), other(w2p), other(b2p),
                    other(wf_row), other(wpf_row), other(bias_tot)]

        return pl.pallas_call(
            kernel,
            out_shape=out_shape,
            grid=grid,
            in_specs=in_specs,
            out_specs=o_spec,
            scratch_shapes=scratch,
            compiler_params=pltpu.CompilerParams(
                dimension_semantics=dims,
                vmem_limit_bytes=vmem_limit,
            ),
        )(x, w_cat, b_cat, w2p, b2p, wf_row, wpf_row, bias_tot)

    try:
        return _call(True)
    except Exception:
        # Fallback if pipeline_mode=pl.Buffered(1) is unsupported on this
        # JAX/Mosaic version: default double-buffered weights.
        return _call(False)


def init_params(key, input_dim):
    """Deterministic init mimicking PyTorch Linear default (U[-1/sqrt(fan_in), +])."""
    def linear(k, fan_in, fan_out):
        kw, kb = jax.random.split(k)
        bound = 1.0 / jnp.sqrt(float(fan_in))
        w = jax.random.uniform(kw, (fan_in, fan_out), jnp.float32, -bound, bound)
        b = jax.random.uniform(kb, (1, fan_out), jnp.float32, -bound, bound)
        return w, b

    keys = jax.random.split(key, 5)
    w1, b1 = linear(keys[0], input_dim, 32)          # mlp[0]
    w2, b2 = linear(keys[1], 32, 32)                 # mlp[2]
    wa, ba = linear(keys[2], input_dim, input_dim)   # attention.W
    wp, bp = linear(keys[3], input_dim, 32)          # Linear created inside forward()
    wf, bf = linear(keys[4], 32, 1)                  # fc
    return {"w1": w1, "b1": b1, "w2": w2, "b2": b2,
            "wa": wa, "ba": ba, "wp": wp, "bp": bp,
            "wf": wf, "bf": bf}


def _reference_forward(x, p):
    """Pure-JAX reference for correctness check."""
    h = jnp.maximum(x @ p["w1"] + p["b1"], 0.0)
    h = jnp.maximum(h @ p["w2"] + p["b2"], 0.0)
    s = x @ p["wa"] + p["ba"]
    a = jax.nn.softmax(s, axis=-1) * x
    proj = a @ p["wp"] + p["bp"]
    return jax.nn.sigmoid((h + proj) @ p["wf"] + p["bf"])


if __name__ == "__main__":
    key = jax.random.PRNGKey(0)
    k_x, k_p, k_x2, k_p2 = jax.random.split(key, 4)

    # Test 1: small model, resident-weight path.
    batch, input_dim = 4, 16
    x = jax.random.normal(k_x, (batch, input_dim), jnp.float32)
    params = init_params(k_p, input_dim)
    out = jax.block_until_ready(classification_model_forward(x, params))
    ref = _reference_forward(x, params)
    assert out.shape == (batch, 1), out.shape
    # bf16 matmul operands + approx reciprocal -> loosened tolerance.
    assert jnp.allclose(out, ref, atol=2e-2, rtol=2e-2), (out, ref)

    # Test 2: force the K-streaming (large-D / v7x) path on a small case.
    batch2, dim2 = 16, 256
    x2 = jax.random.normal(k_x2, (batch2, dim2), jnp.float32)
    params2 = init_params(k_p2, dim2)
    out2 = jax.block_until_ready(
        classification_model_forward(x2, params2, k_block=128))
    ref2 = _reference_forward(x2, params2)
    assert out2.shape == (batch2, 1), out2.shape
    assert jnp.allclose(out2, ref2, atol=2e-2, rtol=2e-2), (out2, ref2)

    print("KERNEL_OK")
</pallas_src>

<mosaic_0001>
module attributes {stable_mosaic.version = 11 : i64} {
  func.func @_fwd_kernel(%arg0: i32, %arg1: memref<8x16xf32, #tpu.memory_space<vmem>>, %arg2: memref<16x144xbf16, #tpu.memory_space<vmem>>, %arg3: memref<1x144xf32, #tpu.memory_space<vmem>>, %arg4: memref<128x128xbf16, #tpu.memory_space<vmem>>, %arg5: memref<1x128xf32, #tpu.memory_space<vmem>>, %arg6: memref<1x128xf32, #tpu.memory_space<vmem>>, %arg7: memref<1x16xf32, #tpu.memory_space<vmem>>, %arg8: memref<1x1xf32, #tpu.memory_space<vmem>>, %arg9: memref<8x1xf32, #tpu.memory_space<vmem>>) attributes {dimension_semantics = [#tpu.dimension_semantics<parallel>], iteration_bounds = array<i64: 1>, scalar_prefetch = 0 : i64, scratch_operands = 0 : i64, tpu.core_type = #tpu.core_type<tc>, window_params = [{transform_indices = @transform_0, window_bounds = array<i64: 8, 16>}, {pipeline_mode = #tpu.pipeline_mode<synchronous>, transform_indices = @transform_1, window_bounds = array<i64: 16, 144>}, {pipeline_mode = #tpu.pipeline_mode<synchronous>, transform_indices = @transform_2, window_bounds = array<i64: 1, 144>}, {pipeline_mode = #tpu.pipeline_mode<synchronous>, transform_indices = @transform_3, window_bounds = array<i64: 128, 128>}, {pipeline_mode = #tpu.pipeline_mode<synchronous>, transform_indices = @transform_4, window_bounds = array<i64: 1, 128>}, {pipeline_mode = #tpu.pipeline_mode<synchronous>, transform_indices = @transform_5, window_bounds = array<i64: 1, 128>}, {pipeline_mode = #tpu.pipeline_mode<synchronous>, transform_indices = @transform_6, window_bounds = array<i64: 1, 16>}, {pipeline_mode = #tpu.pipeline_mode<synchronous>, transform_indices = @transform_7, window_bounds = array<i64: 1, 1>}, {transform_indices = @transform_8, window_bounds = array<i64: 8, 1>}]} {
    %c0 = arith.constant 0 : index
    %c0_0 = arith.constant 0 : index
    %0 = vector.load %arg1[%c0, %c0_0] : memref<8x16xf32, #tpu.memory_space<vmem>>, vector<8x16xf32>
    %1 = arith.truncf %0 : vector<8x16xf32> to vector<8x16xbf16>
    %c0_1 = arith.constant 0 : index
    %c0_2 = arith.constant 0 : index
    %2 = vector.load %arg2[%c0_1, %c0_2] : memref<16x144xbf16, #tpu.memory_space<vmem>>, vector<16x144xbf16>
    %cst = arith.constant dense<0.000000e+00> : vector<8x144xf32>
    %3 = tpu.matmul %1, %2, %cst {dimension_numbers = #tpu.dot_dimension_numbers<[1], [0], [0], [1], [0, 0, 1, 1], [], []>} : vector<8x16xbf16>, vector<16x144xbf16>, vector<8x144xf32> -> vector<8x144xf32>
    %c0_3 = arith.constant 0 : index
    %c0_4 = arith.constant 0 : index
    %4 = vector.load %arg3[%c0_3, %c0_4] : memref<1x144xf32, #tpu.memory_space<vmem>>, vector<1x144xf32>
    %5 = vector.broadcast %4 : vector<1x144xf32> to vector<8x144xf32>
    %6 = arith.addf %3, %5 : vector<8x144xf32>
    %7 = vector.extract_strided_slice %6 {offsets = [0, 0], sizes = [8, 16], strides = [1, 1]} : vector<8x144xf32> to vector<8x16xf32>
    %8 = vector.extract_strided_slice %6 {offsets = [0, 16], sizes = [8, 128], strides = [1, 1]} : vector<8x144xf32> to vector<8x128xf32>
    %cst_5 = arith.constant 0.000000e+00 : f32
    %9 = vector.broadcast %cst_5 : f32 to vector<8x128xf32>
    %10 = arith.maximumf %8, %9 : vector<8x128xf32>
    %cst_6 = arith.constant dense<0xFF800000> : vector<8xf32>
    %11 = vector.multi_reduction <maximumf>, %7, %cst_6 [1] : vector<8x16xf32> to vector<8xf32>
    %12 = vector.shape_cast %11 : vector<8xf32> to vector<8x1xf32>
    %13 = vector.broadcast %12 : vector<8x1xf32> to vector<8x16xf32>
    %14 = arith.subf %7, %13 : vector<8x16xf32>
    %15 = math.exp %14 : vector<8x16xf32>
    %cst_7 = arith.constant dense<0.000000e+00> : vector<8xf32>
    %16 = vector.multi_reduction <add>, %15, %cst_7 [1] : vector<8x16xf32> to vector<8xf32>
    %17 = vector.shape_cast %16 : vector<8xf32> to vector<8x1xf32>
    %18 = tpu.reciprocal %17 {approx = true} : vector<8x1xf32> -> vector<8x1xf32>
    %19 = vector.broadcast %18 : vector<8x1xf32> to vector<8x16xf32>
    %20 = arith.mulf %15, %19 : vector<8x16xf32>
    %21 = arith.mulf %20, %0 : vector<8x16xf32>
    %22 = arith.truncf %10 : vector<8x128xf32> to vector<8x128xbf16>
    %c0_8 = arith.constant 0 : index
    %c0_9 = arith.constant 0 : index
    %23 = vector.load %arg4[%c0_8, %c0_9] : memref<128x128xbf16, #tpu.memory_space<vmem>>, vector<128x128xbf16>
    %cst_10 = arith.constant dense<0.000000e+00> : vector<8x128xf32>
    %24 = tpu.matmul %22, %23, %cst_10 {dimension_numbers = #tpu.dot_dimension_numbers<[1], [0], [0], [1], [0, 0, 1, 1], [], []>} : vector<8x128xbf16>, vector<128x128xbf16>, vector<8x128xf32> -> vector<8x128xf32>
    %c0_11 = arith.constant 0 : index
    %c0_12 = arith.constant 0 : index
    %25 = vector.load %arg5[%c0_11, %c0_12] : memref<1x128xf32, #tpu.memory_space<vmem>>, vector<1x128xf32>
    %26 = vector.broadcast %25 : vector<1x128xf32> to vector<8x128xf32>
    %27 = arith.addf %24, %26 : vector<8x128xf32>
    %cst_13 = arith.constant 0.000000e+00 : f32
    %28 = vector.broadcast %cst_13 : f32 to vector<8x128xf32>
    %29 = arith.maximumf %27, %28 : vector<8x128xf32>
    %c0_14 = arith.constant 0 : index
    %c0_15 = arith.constant 0 : index
    %30 = vector.load %arg6[%c0_14, %c0_15] : memref<1x128xf32, #tpu.memory_space<vmem>>, vector<1x128xf32>
    %31 = vector.broadcast %30 : vector<1x128xf32> to vector<8x128xf32>
    %32 = arith.mulf %29, %31 : vector<8x128xf32>
    %cst_16 = arith.constant dense<0.000000e+00> : vector<8xf32>
    %33 = vector.multi_reduction <add>, %32, %cst_16 [1] : vector<8x128xf32> to vector<8xf32>
    %34 = vector.shape_cast %33 : vector<8xf32> to vector<8x1xf32>
    %c0_17 = arith.constant 0 : index
    %c0_18 = arith.constant 0 : index
    %35 = vector.load %arg7[%c0_17, %c0_18] : memref<1x16xf32, #tpu.memory_space<vmem>>, vector<1x16xf32>
    %36 = vector.broadcast %35 : vector<1x16xf32> to vector<8x16xf32>
    %37 = arith.mulf %21, %36 : vector<8x16xf32>
    %cst_19 = arith.constant dense<0.000000e+00> : vector<8xf32>
    %38 = vector.multi_reduction <add>, %37, %cst_19 [1] : vector<8x16xf32> to vector<8xf32>
    %39 = vector.shape_cast %38 : vector<8xf32> to vector<8x1xf32>
    %40 = arith.addf %34, %39 : vector<8x1xf32>
    %c0_20 = arith.constant 0 : index
    %c0_21 = arith.constant 0 : index
    %41 = vector.load %arg8[%c0_20, %c0_21] : memref<1x1xf32, #tpu.memory_space<vmem>>, vector<1x1xf32>
    %42 = vector.broadcast %41 : vector<1x1xf32> to vector<8x1xf32>
    %43 = arith.addf %40, %42 : vector<8x1xf32>
    %cst_22 = arith.constant 0.000000e+00 : f32
    %44 = vector.broadcast %cst_22 : f32 to vector<8x1xf32>
    %45 = arith.subf %44, %43 : vector<8x1xf32>
    %46 = math.exp %45 : vector<8x1xf32>
    %cst_23 = arith.constant 1.000000e+00 : f32
    %47 = vector.broadcast %cst_23 : f32 to vector<8x1xf32>
    %48 = arith.addf %47, %46 : vector<8x1xf32>
    %cst_24 = arith.constant 1.000000e+00 : f32
    %49 = vector.broadcast %cst_24 : f32 to vector<8x1xf32>
    %50 = arith.divf %49, %48 : vector<8x1xf32>
    %c0_25 = arith.constant 0 : index
    %c0_26 = arith.constant 0 : index
    %51 = vector.load %arg9[%c0_25, %c0_26] : memref<8x1xf32, #tpu.memory_space<vmem>>, vector<8x1xf32>
    tpu.vector_store %arg9[%c0_25, %c0_26], %50 {strides = array<i32>} : memref<8x1xf32, #tpu.memory_space<vmem>>, vector<8x1xf32>,
    return
  }
  func.func @transform_0(%arg0: i32) -> (i32, i32) {
    %c0_i32 = arith.constant 0 : i32
    %c0_i32_0 = arith.constant 0 : i32
    return %arg0, %c0_i32 : i32, i32
  }
  func.func @transform_1(%arg0: i32) -> (i32, i32) {
    %c0_i32 = arith.constant 0 : i32
    %c0_i32_0 = arith.constant 0 : i32
    %c0_i32_1 = arith.constant 0 : i32
    return %c0_i32, %c0_i32_0 : i32, i32
  }
  func.func @transform_2(%arg0: i32) -> (i32, i32) {
    %c0_i32 = arith.constant 0 : i32
    %c0_i32_0 = arith.constant 0 : i32
    %c0_i32_1 = arith.constant 0 : i32
    return %c0_i32, %c0_i32_0 : i32, i32
  }
  func.func @transform_3(%arg0: i32) -> (i32, i32) {
    %c0_i32 = arith.constant 0 : i32
    %c0_i32_0 = arith.constant 0 : i32
    %c0_i32_1 = arith.constant 0 : i32
    return %c0_i32, %c0_i32_0 : i32, i32
  }
  func.func @transform_4(%arg0: i32) -> (i32, i32) {
    %c0_i32 = arith.constant 0 : i32
    %c0_i32_0 = arith.constant 0 : i32
    %c0_i32_1 = arith.constant 0 : i32
    return %c0_i32, %c0_i32_0 : i32, i32
  }
  func.func @transform_5(%arg0: i32) -> (i32, i32) {
    %c0_i32 = arith.constant 0 : i32
    %c0_i32_0 = arith.constant 0 : i32
    %c0_i32_1 = arith.constant 0 : i32
    return %c0_i32, %c0_i32_0 : i32, i32
  }
  func.func @transform_6(%arg0: i32) -> (i32, i32) {
    %c0_i32 = arith.constant 0 : i32
    %c0_i32_0 = arith.constant 0 : i32
    %c0_i32_1 = arith.constant 0 : i32
    return %c0_i32, %c0_i32_0 : i32, i32
  }
  func.func @transform_7(%arg0: i32) -> (i32, i32) {
    %c0_i32 = arith.constant 0 : i32
    %c0_i32_0 = arith.constant 0 : i32
    %c0_i32_1 = arith.constant 0 : i32
    return %c0_i32, %c0_i32_0 : i32, i32
  }
  func.func @transform_8(%arg0: i32) -> (i32, i32) {
    %c0_i32 = arith.constant 0 : i32
    %c0_i32_0 = arith.constant 0 : i32
    return %arg0, %c0_i32 : i32, i32
  }
}

module attributes {stable_mosaic.version = 11 : i64} {
  func.func @_fwd_kernel(%arg0: i32, %arg1: memref<8x16xf32, #tpu.memory_space<vmem>>, %arg2: memref<16x144xbf16, #tpu.memory_space<vmem>>, %arg3: memref<1x144xf32, #tpu.memory_space<vmem>>, %arg4: memref<128x128xbf16, #tpu.memory_space<vmem>>, %arg5: memref<1x128xf32, #tpu.memory_space<vmem>>, %arg6: memref<1x128xf32, #tpu.memory_space<vmem>>, %arg7: memref<1x16xf32, #tpu.memory_space<vmem>>, %arg8: memref<1x1xf32, #tpu.memory_space<vmem>>, %arg9: memref<8x1xf32, #tpu.memory_space<vmem>>) attributes {dimension_semantics = [#tpu.dimension_semantics<parallel>], iteration_bounds = array<i64: 1>, scalar_prefetch = 0 : i64, scratch_operands = 0 : i64, tpu.core_type = #tpu.core_type<tc>, window_params = [{transform_indices = @transform_0, window_bounds = array<i64: 8, 16>}, {pipeline_mode = #tpu.pipeline_mode<synchronous>, transform_indices = @transform_1, window_bounds = array<i64: 16, 144>}, {pipeline_mode = #tpu.pipeline_mode<synchronous>, transform_indices = @transform_2, window_bounds = array<i64: 1, 144>}, {pipeline_mode = #tpu.pipeline_mode<synchronous>, transform_indices = @transform_3, window_bounds = array<i64: 128, 128>}, {pipeline_mode = #tpu.pipeline_mode<synchronous>, transform_indices = @transform_4, window_bounds = array<i64: 1, 128>}, {pipeline_mode = #tpu.pipeline_mode<synchronous>, transform_indices = @transform_5, window_bounds = array<i64: 1, 128>}, {pipeline_mode = #tpu.pipeline_mode<synchronous>, transform_indices = @transform_6, window_bounds = array<i64: 1, 16>}, {pipeline_mode = #tpu.pipeline_mode<synchronous>, transform_indices = @transform_7, window_bounds = array<i64: 1, 1>}, {transform_indices = @transform_8, window_bounds = array<i64: 8, 1>}]} {
    %c0 = arith.constant 0 : index
    %c0_0 = arith.constant 0 : index
    %0 = vector.load %arg1[%c0, %c0_0] : memref<8x16xf32, #tpu.memory_space<vmem>>, vector<8x16xf32>
    %1 = arith.truncf %0 : vector<8x16xf32> to vector<8x16xbf16>
    %c0_1 = arith.constant 0 : index
    %c0_2 = arith.constant 0 : index
    %2 = vector.load %arg2[%c0_1, %c0_2] : memref<16x144xbf16, #tpu.memory_space<vmem>>, vector<16x144xbf16>
    %cst = arith.constant dense<0.000000e+00> : vector<8x144xf32>
    %3 = tpu.matmul %1, %2, %cst {dimension_numbers = #tpu.dot_dimension_numbers<[1], [0], [0], [1], [0, 0, 1, 1], [], []>} : vector<8x16xbf16>, vector<16x144xbf16>, vector<8x144xf32> -> vector<8x144xf32>
    %c0_3 = arith.constant 0 : index
    %c0_4 = arith.constant 0 : index
    %4 = vector.load %arg3[%c0_3, %c0_4] : memref<1x144xf32, #tpu.memory_space<vmem>>, vector<1x144xf32>
    %5 = vector.broadcast %4 : vector<1x144xf32> to vector<8x144xf32>
    %6 = arith.addf %3, %5 : vector<8x144xf32>
    %7 = vector.extract_strided_slice %6 {offsets = [0, 0], sizes = [8, 16], strides = [1, 1]} : vector<8x144xf32> to vector<8x16xf32>
    %8 = vector.extract_strided_slice %6 {offsets = [0, 16], sizes = [8, 128], strides = [1, 1]} : vector<8x144xf32> to vector<8x128xf32>
    %cst_5 = arith.constant 0.000000e+00 : f32
    %9 = vector.broadcast %cst_5 : f32 to vector<8x128xf32>
    %10 = arith.maximumf %8, %9 : vector<8x128xf32>
    %cst_6 = arith.constant dense<0xFF800000> : vector<8xf32>
    %11 = vector.multi_reduction <maximumf>, %7, %cst_6 [1] : vector<8x16xf32> to vector<8xf32>
    %12 = vector.shape_cast %11 : vector<8xf32> to vector<8x1xf32>
    %13 = vector.broadcast %12 : vector<8x1xf32> to vector<8x16xf32>
    %14 = arith.subf %7, %13 : vector<8x16xf32>
    %15 = math.exp %14 : vector<8x16xf32>
    %cst_7 = arith.constant dense<0.000000e+00> : vector<8xf32>
    %16 = vector.multi_reduction <add>, %15, %cst_7 [1] : vector<8x16xf32> to vector<8xf32>
    %17 = vector.shape_cast %16 : vector<8xf32> to vector<8x1xf32>
    %18 = tpu.reciprocal %17 {approx = true} : vector<8x1xf32> -> vector<8x1xf32>
    %19 = vector.broadcast %18 : vector<8x1xf32> to vector<8x16xf32>
    %20 = arith.mulf %15, %19 : vector<8x16xf32>
    %21 = arith.mulf %20, %0 : vector<8x16xf32>
    %22 = arith.truncf %10 : vector<8x128xf32> to vector<8x128xbf16>
    %c0_8 = arith.constant 0 : index
    %c0_9 = arith.constant 0 : index
    %23 = vector.load %arg4[%c0_8, %c0_9] : memref<128x128xbf16, #tpu.memory_space<vmem>>, vector<128x128xbf16>
    %cst_10 = arith.constant dense<0.000000e+00> : vector<8x128xf32>
    %24 = tpu.matmul %22, %23, %cst_10 {dimension_numbers = #tpu.dot_dimension_numbers<[1], [0], [0], [1], [0, 0, 1, 1], [], []>} : vector<8x128xbf16>, vector<128x128xbf16>, vector<8x128xf32> -> vector<8x128xf32>
    %c0_11 = arith.constant 0 : index
    %c0_12 = arith.constant 0 : index
    %25 = vector.load %arg5[%c0_11, %c0_12] : memref<1x128xf32, #tpu.memory_space<vmem>>, vector<1x128xf32>
    %26 = vector.broadcast %25 : vector<1x128xf32> to vector<8x128xf32>
    %27 = arith.addf %24, %26 : vector<8x128xf32>
    %cst_13 = arith.constant 0.000000e+00 : f32
    %28 = vector.broadcast %cst_13 : f32 to vector<8x128xf32>
    %29 = arith.maximumf %27, %28 : vector<8x128xf32>
    %c0_14 = arith.constant 0 : index
    %c0_15 = arith.constant 0 : index
    %30 = vector.load %arg6[%c0_14, %c0_15] : memref<1x128xf32, #tpu.memory_space<vmem>>, vector<1x128xf32>
    %31 = vector.broadcast %30 : vector<1x128xf32> to vector<8x128xf32>
    %32 = arith.mulf %29, %31 : vector<8x128xf32>
    %cst_16 = arith.constant dense<0.000000e+00> : vector<8xf32>
    %33 = vector.multi_reduction <add>, %32, %cst_16 [1] : vector<8x128xf32> to vector<8xf32>
    %34 = vector.shape_cast %33 : vector<8xf32> to vector<8x1xf32>
    %c0_17 = arith.constant 0 : index
    %c0_18 = arith.constant 0 : index
    %35 = vector.load %arg7[%c0_17, %c0_18] : memref<1x16xf32, #tpu.memory_space<vmem>>, vector<1x16xf32>
    %36 = vector.broadcast %35 : vector<1x16xf32> to vector<8x16xf32>
    %37 = arith.mulf %21, %36 : vector<8x16xf32>
    %cst_19 = arith.constant dense<0.000000e+00> : vector<8xf32>
    %38 = vector.multi_reduction <add>, %37, %cst_19 [1] : vector<8x16xf32> to vector<8xf32>
    %39 = vector.shape_cast %38 : vector<8xf32> to vector<8x1xf32>
    %40 = arith.addf %34, %39 : vector<8x1xf32>
    %c0_20 = arith.constant 0 : index
    %c0_21 = arith.constant 0 : index
    %41 = vector.load %arg8[%c0_20, %c0_21] : memref<1x1xf32, #tpu.memory_space<vmem>>, vector<1x1xf32>
    %42 = vector.broadcast %41 : vector<1x1xf32> to vector<8x1xf32>
    %43 = arith.addf %40, %42 : vector<8x1xf32>
    %cst_22 = arith.constant 0.000000e+00 : f32
    %44 = vector.broadcast %cst_22 : f32 to vector<8x1xf32>
    %45 = arith.subf %44, %43 : vector<8x1xf32>
    %46 = math.exp %45 : vector<8x1xf32>
    %cst_23 = arith.constant 1.000000e+00 : f32
    %47 = vector.broadcast %cst_23 : f32 to vector<8x1xf32>
    %48 = arith.addf %47, %46 : vector<8x1xf32>
    %cst_24 = arith.constant 1.000000e+00 : f32
    %49 = vector.broadcast %cst_24 : f32 to vector<8x1xf32>
    %50 = arith.divf %49, %48 : vector<8x1xf32>
    %c0_25 = arith.constant 0 : index
    %c0_26 = arith.constant 0 : index
    %51 = vector.load %arg9[%c0_25, %c0_26] : memref<8x1xf32, #tpu.memory_space<vmem>>, vector<8x1xf32>
    tpu.vector_store %arg9[%c0_25, %c0_26], %50 {strides = array<i32>} : memref<8x1xf32, #tpu.memory_space<vmem>>, vector<8x1xf32>,
    return
  }
  func.func @transform_0(%arg0: i32) -> (i32, i32) {
    %c0_i32 = arith.constant 0 : i32
    %c0_i32_0 = arith.constant 0 : i32
    return %arg0, %c0_i32 : i32, i32
  }
  func.func @transform_1(%arg0: i32) -> (i32, i32) {
    %c0_i32 = arith.constant 0 : i32
    %c0_i32_0 = arith.constant 0 : i32
    %c0_i32_1 = arith.constant 0 : i32
    return %c0_i32, %c0_i32_0 : i32, i32
  }
  func.func @transform_2(%arg0: i32) -> (i32, i32) {
    %c0_i32 = arith.constant 0 : i32
    %c0_i32_0 = arith.constant 0 : i32
    %c0_i32_1 = arith.constant 0 : i32
    return %c0_i32, %c0_i32_0 : i32, i32
  }
  func.func @transform_3(%arg0: i32) -> (i32, i32) {
    %c0_i32 = arith.constant 0 : i32
    %c0_i32_0 = arith.constant 0 : i32
    %c0_i32_1 = arith.constant 0 : i32
    return %c0_i32, %c0_i32_0 : i32, i32
  }
  func.func @transform_4(%arg0: i32) -> (i32, i32) {
    %c0_i32 = arith.constant 0 : i32
    %c0_i32_0 = arith.constant 0 : i32
    %c0_i32_1 = arith.constant 0 : i32
    return %c0_i32, %c0_i32_0 : i32, i32
  }
  func.func @transform_5(%arg0: i32) -> (i32, i32) {
    %c0_i32 = arith.constant 0 : i32
    %c0_i32_0 = arith.constant 0 : i32
    %c0_i32_1 = arith.constant 0 : i32
    return %c0_i32, %c0_i32_0 : i32, i32
  }
  func.func @transform_6(%arg0: i32) -> (i32, i32) {
    %c0_i32 = arith.constant 0 : i32
    %c0_i32_0 = arith.constant 0 : i32
    %c0_i32_1 = arith.constant 0 : i32
    return %c0_i32, %c0_i32_0 : i32, i32
  }
  func.func @transform_7(%arg0: i32) -> (i32, i32) {
    %c0_i32 = arith.constant 0 : i32
    %c0_i32_0 = arith.constant 0 : i32
    %c0_i32_1 = arith.constant 0 : i32
    return %c0_i32, %c0_i32_0 : i32, i32
  }
  func.func @transform_8(%arg0: i32) -> (i32, i32) {
    %c0_i32 = arith.constant 0 : i32
    %c0_i32_0 = arith.constant 0 : i32
    return %arg0, %c0_i32 : i32, i32
  }
}

</mosaic_0001>

<bundles_post_ra>
// kernel: tpu_custom_call.1
= control target key start
LH: loop header
LB: loop body
LE: loop exit
PB: predicated region body
PF: predicated region fallthrough
CT: control target
= control target key end

     0   :  { %s592_s0 = inlined_call_operand.hbm [shape: f32[4,16], index: 0, kind: input, shape index: {}]   ;;  %s593_s1 = inlined_call_operand.hbm [shape: bf16[16,144], index: 1, kind: input, shape index: {}]   ;;  %s594_s2 = inlined_call_operand.vmem [shape: f32[1,144], index: 2, kind: input, shape index: {}]   ;;  %s595_s3 = inlined_call_operand.hbm [shape: bf16[128,128], index: 3, kind: input, shape index: {}]   ;;  %s596_s4 = inlined_call_operand.vmem [shape: f32[1,128], index: 4, kind: input, shape index: {}]   ;;  %s597_s5 = inlined_call_operand.vmem [shape: f32[1,128], index: 5, kind: input, shape index: {}]   ;;  %s598_s6 = inlined_call_operand.vmem [shape: f32[1,16], index: 6, kind: input, shape index: {}]   ;;  %s599_s7 = inlined_call_operand.<no memory space> [shape: f32[1,1], index: 7, kind: input, shape index: {}]   ;;  %s600_s8 = inlined_call_operand.vmem [shape: f32[4,1], index: 8, kind: output, shape index: {}]  }
   0x1   :  { %v13_v0 = vstv %s599_s7 }
   0x2   :  { %14 = vst [vmem:[#allocation2] sm:$0x1] %v13_v0 }
   0x3   :  { %15 = vsyncpa [#allocation4], 0 }
   0x4   :  { %16 = vsyncpa [#allocation6], 0 }
   0x5   :  { %21 = vsyncadd [#allocation4], 64  ;;  %s500_s29 = smov [#allocation5]  }
   0x6   :  { %s34_s30 = sshll.u32 %s500_s29, 4  ;;  %s35_s30 = int_to_ptr.vmem [resolvable:$true] %s34_s30 }
   0x7   :  { %s444_s9 = scalar_lea.vmem %s35_s30, 256  ;;  %p449_p1 = scmp.lt.s32.totalorder %s35_s30, %s35_s30 }
   0x8   :  { %p445_p0 = scmp.ne.s32.totalorder %s35_s30, %s444_s9  ;;  %p450_p2 = scmp.lt.s32.totalorder %s444_s9, %s444_s9 }
   0xa   :  { %p451_p3 = por %p450_p2, %p449_p1 }
   0xc   :  { %p452_p4 = pnand %p451_p3, %p445_p0 }
   0xe   :  { %455 = shalt.err (!%p452_p4)
}
   0xf   :  { %s501_s10 = smov 128   ;;  %s502_s11 = smov 8  }
  0x10   :  { %40 = dma.hbm_to_vmem [thread:$0]  %s593_s1, 256, %s35_s30, [#allocation6], %s501_s10, %s501_s10, %s502_s11  }
  0x11   :  { %s503_s7 = smov [#allocation3]  }
  0x12   :  { %s22_s14 = sshll.u32 %s503_s7, 4  ;;  %s23_s14 = int_to_ptr.vmem [resolvable:$true] %s22_s14 }
  0x13   :  { %s464_s15 = scalar_lea.vmem %s23_s14, 64  ;;  %s468_s16 = scalar_lea.vmem %s23_s14, 128 }
  0x14   :  { %p465_p5 = scmp.ne.s32.totalorder %s23_s14, %s464_s15  ;;  %p469_p6 = scmp.lt.s32.totalorder %s23_s14, %s23_s14 }
  0x15   :  { %p470_p7 = scmp.lt.s32.totalorder %s468_s16, %s464_s15 }
  0x17   :  { %p471_p8 = por %p470_p7, %p469_p6 }
  0x19   :  { %p472_p9 = pnand %p471_p8, %p465_p5 }
  0x1b   :  { %475 = shalt.err (!%p472_p9)
}
  0x1c   :  { %s504_s17 = smov 64   ;;  %s505_s18 = smov 4  }
  0x1d   :  { %28 = dma.hbm_to_vmem [thread:$0]  %s592_s0, 64, %s23_s14, [#allocation4], %s504_s17, %s504_s17, %s505_s18  }
  0x1e   :  { %s506_s21 = smov [#allocation7]  }
  0x1f   :  { %s48_s22 = sshll.u32 %s506_s21, 4  ;;  %s49_s22 = int_to_ptr.vmem [resolvable:$true] %s48_s22 }
  0x20   :  { %s484_s1 = scalar_lea.vmem %s49_s22, 1024  ;;  %p489_p11 = scmp.lt.s32.totalorder %s49_s22, %s49_s22 }
  0x21   :  { %p485_p10 = scmp.ne.s32.totalorder %s49_s22, %s484_s1  ;;  %p490_p12 = scmp.lt.s32.totalorder %s484_s1, %s484_s1 }
  0x23   :  { %p491_p13 = por %p490_p12, %p489_p11 }
  0x25   :  { %p492_p0 = pnand %p491_p13, %p485_p10 }
  0x27   :  { %495 = shalt.err (!%p492_p0)
}
  0x28   :  { %54 = dma.hbm_to_vmem [thread:$0]  %s595_s3, 1024, %s49_s22, [#allocation6], %s504_s17, %s504_s17, %s505_s18  }
  0x29   :  { %496 = dma.done.wait [#allocation4], 128  }
  0x2a   :  { %497 = vsyncadd [#allocation4], 4294967168 }
  0x2b   :  { %498 = dma.done.wait [#allocation6], 1280  }
  0x2c   :  { %499 = vsyncadd [#allocation6], 4294966016  ;;  %v507_v1 = vmov 0   ;;  %v417_v2 = vld [vmem:[#allocation5 + $0x4] ss:$8 sps:$4 sm:$0xff]   ;;  %v568_v4 = vld [vmem:[#allocation3] sm:$0xff]  ;;  %v79_v14 = vlaneseq }
  0x2d   :  { %135 = vmatprep.mubr.bf16.mxu0 %v507_v1  ;;  %v419_v3 = vld [vmem:[#allocation5] ss:$8 sps:$4 sm:$0xff]   ;;  %vm99_vm0 = vcmask 130048   ;;  %117 = vmatprep.subr.bf16.mxu0 %v417_v2  ;;  %v74_v5 = vpack.c.bf16 %v568_v4, %v568_v4  ;;  %v508_v7 = vmov 0.0   ;;  %v422_v9 = vld [vmem:[#allocation7 + $0x28] sm:$0xff]   ;;  %v423_v10 = vld [vmem:[#allocation7 + $0x20] sm:$0xff]  }
  0x2e   :  { %118 = vmatpush1.bf16.msra.mxu0 %v419_v3  ;;  %v420_v6 = vld [vmem:[#allocation7 + $0x38] sm:$0xff]   ;;  %386 = vmatprep.subr.bf16.mxu1 %v508_v7  ;;  %v421_v8 = vld [vmem:[#allocation7 + $0x30] sm:$0xff]   ;;  %v426_v13 = vld [vmem:[#allocation7 + $0x8] sm:$0xff]   ;;  %v80_v15 = vshrl.u32 %v79_v14, 7  ;;  %vm509_vm1 = vmmov 0   ;;  %s510_s25 = smov 112  }
  0x2f   :  { %387 = vmatpush3.bf16.msra.mxu1 %v420_v6  ;;  %v424_v11 = vld [vmem:[#allocation7 + $0x18] sm:$0xff]   ;;  %v425_v12 = vld [vmem:[#allocation7 + $0x10] sm:$0xff]   ;;  %v427_v17 = vld [vmem:[#allocation7] sm:$0xff]   ;;  %402 = vmatprep.mubr.msk.bf16.mxu1 %vm509_vm1, %v508_v7  ;;  %vm189_vm2 = vcmask 916480   ;;  %vm317_vm3 = vcmask 7168  }
  0x30   :  { %388 = vmatprep.subr.bf16.mxu1 %v508_v7  ;;  %v81_v16 = vsub.s32 0, %v80_v15  ;;  %v77_v18 = vld [vmem:[%s594_s2] sm:$0x3]  ;;  %v85_v19 = vsub.s32 1, %v80_v15 }
  0x31   :  { %364 = vmatmul.mubr.msk.bf16.vlgmr.msra.gmra.mxu0 %vm99_vm0, %v74_v5  ;;  %v375_v44 = vld [vmem:[%s598_s6] ss:$0 sm:$0xff] }
  0x32   :  { %v82_v20 = vrot.slane %v77_v18, %v81_v16  ;;  %v86_v21 = vrot.slane %v77_v18, %v85_v19  ;;  %v365_v46 = vld [vmem:[%s596_s4] ss:$0 sm:$0xff] }
  0x33   :  { %389 = vmatpush3.bf16.msra.mxu1 %v421_v8  ;;  %v374_v52 = vld [vmem:[%s597_s5] ss:$0 sm:$0xff] }
  0x34   :  { %390 = vmatprep.subr.bf16.mxu1 %v508_v7  ;;  %v376_v58 = vld [vmem:[#allocation2] ss:$0 sm:$0xff] }
  0x37   :  { %391 = vmatpush3.bf16.msra.mxu1 %v422_v9 }
  0x38   :  { %392 = vmatprep.subr.bf16.mxu1 %v508_v7 }
  0x3b   :  { %393 = vmatpush3.bf16.msra.mxu1 %v423_v10 }
  0x3c   :  { %394 = vmatprep.subr.bf16.mxu1 %v508_v7 }
  0x3f   :  { %395 = vmatpush3.bf16.msra.mxu1 %v424_v11 }
  0x40   :  { %396 = vmatprep.subr.bf16.mxu1 %v508_v7 }
  0x43   :  { %397 = vmatpush3.bf16.msra.mxu1 %v425_v12 }
  0x44   :  { %398 = vmatprep.subr.bf16.mxu1 %v508_v7 }
  0x47   :  { %399 = vmatpush3.bf16.msra.mxu1 %v426_v13 }
  0x48   :  { %400 = vmatprep.subr.bf16.mxu1 %v508_v7 }
  0x4b   :  { %401 = vmatpush3.bf16.msra.mxu1 %v427_v17 }
  0xf1   :  { %v137_v22 = vpop.f32.mrf.mxu0 }
  0xf2   :  { %v138_v23 = vadd.f32 %v137_v22, %v82_v20 }
  0xf3   :  { %v139_v24 = vpop.f32.mrf.mxu0 }
  0xf4   :  { %v140_v25 = vadd.f32 %v139_v24, %v86_v21  ;;  %v146_v26 = vsel %vm99_vm0, %v138_v23, -inf  ;;  %v144_v27 = vmax.f32 %v138_v23, 0.0 }
  0xf5   :  { %v141_v28 = vpop.f32.mrf.mxu0  ;;  %147 = vmax.xlane.f32.xlu1 %v146_v26 }
  0xf6   :  { %v145_v29 = vmax.f32 %v140_v25, 0.0  ;;  %v158_v30 = vpack.c.bf16 %v144_v27, %v144_v27 }
  0xf7   :  { %v142_v31 = vpop.f32.mrf.mxu0 }
  0xf8   :  { %185 = vrot.lane.b32.xlu0 %v158_v30, %s510_s25  ;;  %v159_v32 = vpack.c.bf16 %v145_v29, %v145_v29 }
  0xfc   :  { %187 = vrot.lane.b32.xlu0 %v159_v32, %s510_s25 }
 0x16a   :  { %v186_v33 = vpop.permute.xlu0 %185 }
 0x16e   :  { %v188_v34 = vpop.permute.xlu0 %187 }
 0x16f   :  { %v190_v35 = vsel %vm189_vm2, %v186_v33, %v188_v34 }
 0x170   :  { %403 = vmatmul.mubr.bf16.vlgmr.msra.gmra.mxu1 %v190_v35 }
 0x17e   :  { %v148_v36 = vpop.xlane.xlu1 %147 }
 0x17f   :  { %v149_v37 = vsub.f32 %v138_v23, %v148_v36 }
 0x181   :  { %v150_v38 = vmul.f32 1.442695, %v149_v37 }
 0x183   :  { %428 = vpow2.f32 %v150_v38 }
 0x190   :  { %v429_v39 = vpop.eup %428 }
 0x191   :  { %v152_v40 = vsel %vm99_vm0, %v429_v39, 0.0 }
 0x192   :  { %153 = vadd.xlane.f32.xlu1 %v152_v40 }
 0x21b   :  { %v154_v41 = vpop.xlane.xlu1 %153 }
 0x21c   :  { %430 = vrcp.f32 %v154_v41 }
 0x229   :  { %v431_v42 = vpop.eup %430 }
 0x22a   :  { %v156_v43 = vmul.f32 %v431_v42, %v429_v39 }
 0x22c   :  { %v157_v45 = vmul.f32 %v156_v43, %v568_v4 }
 0x22e   :  { %v298_v47 = vmul.f32 %v375_v44, %v157_v45 }
 0x230   :  { %v274_v48 = vpop.f32.mrf.mxu1  ;;  %v299_v49 = vsel %vm99_vm0, %v298_v47, 0.0 }
 0x231   :  { %v275_v50 = vadd.f32 %v365_v46, %v274_v48  ;;  %300 = vadd.xlane.f32.xlu1 %v299_v49 }
 0x232   :  { %v404_v51 = vpop.f32.mrf.mxu1 }
 0x233   :  { %v280_v53 = vmax.f32 %v275_v50, 0.0 }
 0x234   :  { %v277_v54 = vpop.f32.mrf.mxu1 }
 0x235   :  { %v288_v55 = vmul.f32 %v374_v52, %v280_v53 }
 0x236   :  { %v405_v56 = vpop.f32.mrf.mxu1 }
 0x237   :  { %289 = vadd.xlane.f32.xlu0 %v288_v55 }
 0x2ba   :  { %v301_v57 = vpop.xlane.xlu1 %300 }
 0x2c0   :  { %v290_v59 = vpop.xlane.xlu0 %289 }
 0x2c1   :  { %v302_v60 = vadd.f32 %v301_v57, %v290_v59 }
 0x2c3   :  { %v310_v61 = vadd.f32 %v376_v58, %v302_v60 }
 0x2c5   :  { %v311_v62 = vsub.f32 0.0, %v310_v61 }
 0x2c7   :  { %v312_v63 = vmul.f32 1.442695, %v311_v62 }
 0x2c9   :  { %432 = vpow2.f32 %v312_v63 }
 0x2d6   :  { %v433_v0 = vpop.eup %432 }
 0x2d7   :  { %v314_v1 = vadd.f32 1.0, %v433_v0 }
 0x2d9   :  { %434 = vrcp.f32 %v314_v1 }
 0x2e6   :  { %v435_v2 = vpop.eup %434 }
 0x2e7   :  { %318 = vst.msk [vmem:[#allocation8] sm:$0xff] %vm317_vm3, %v435_v2 }
 0x2ee   :  { %v337_v3 = vld [vmem:[#allocation8] sm:$0xf] }
 0x2ef   :  { %338 = vst [vmem:[%s600_s8] sm:$0xf] %v337_v3 }
 0x2f0   :  { %356 = vsyncpa [#allocation4], 1 }
 0x2f1   :  { %357 = vsyncpa [#allocation6], 1 }

// kernel: tpu_custom_call.1
= control target key start
LH: loop header
LB: loop body
LE: loop exit
PB: predicated region body
PF: predicated region fallthrough
CT: control target
= control target key end

     0   :  { %s592_s0 = inlined_call_operand.hbm [shape: f32[4,16], index: 0, kind: input, shape index: {}]   ;;  %s593_s1 = inlined_call_operand.hbm [shape: bf16[16,144], index: 1, kind: input, shape index: {}]   ;;  %s594_s2 = inlined_call_operand.vmem [shape: f32[1,144], index: 2, kind: input, shape index: {}]   ;;  %s595_s3 = inlined_call_operand.hbm [shape: bf16[128,128], index: 3, kind: input, shape index: {}]   ;;  %s596_s4 = inlined_call_operand.vmem [shape: f32[1,128], index: 4, kind: input, shape index: {}]   ;;  %s597_s5 = inlined_call_operand.vmem [shape: f32[1,128], index: 5, kind: input, shape index: {}]   ;;  %s598_s6 = inlined_call_operand.vmem [shape: f32[1,16], index: 6, kind: input, shape index: {}]   ;;  %s599_s7 = inlined_call_operand.<no memory space> [shape: f32[1,1], index: 7, kind: input, shape index: {}]   ;;  %s600_s8 = inlined_call_operand.vmem [shape: f32[4,1], index: 8, kind: output, shape index: {}]  }
   0x1   :  { %v13_v0 = vstv %s599_s7 }
   0x2   :  { %14 = vst [vmem:[#allocation2] sm:$0x1] %v13_v0 }
   0x3   :  { %15 = vsyncpa [#allocation4], 0 }
   0x4   :  { %16 = vsyncpa [#allocation6], 0 }
   0x5   :  { %21 = vsyncadd [#allocation4], 64  ;;  %s500_s29 = smov [#allocation5]  }
   0x6   :  { %s34_s30 = sshll.u32 %s500_s29, 4  ;;  %s35_s30 = int_to_ptr.vmem [resolvable:$true] %s34_s30 }
   0x7   :  { %s444_s9 = scalar_lea.vmem %s35_s30, 256  ;;  %p449_p1 = scmp.lt.s32.totalorder %s35_s30, %s35_s30 }
   0x8   :  { %p445_p0 = scmp.ne.s32.totalorder %s35_s30, %s444_s9  ;;  %p450_p2 = scmp.lt.s32.totalorder %s444_s9, %s444_s9 }
   0xa   :  { %p451_p3 = por %p450_p2, %p449_p1 }
   0xc   :  { %p452_p4 = pnand %p451_p3, %p445_p0 }
   0xe   :  { %455 = shalt.err (!%p452_p4)
}
   0xf   :  { %s501_s10 = smov 128   ;;  %s502_s11 = smov 8  }
  0x10   :  { %40 = dma.hbm_to_vmem [thread:$0]  %s593_s1, 256, %s35_s30, [#allocation6], %s501_s10, %s501_s10, %s502_s11  }
  0x11   :  { %s503_s7 = smov [#allocation3]  }
  0x12   :  { %s22_s14 = sshll.u32 %s503_s7, 4  ;;  %s23_s14 = int_to_ptr.vmem [resolvable:$true] %s22_s14 }
  0x13   :  { %s464_s15 = scalar_lea.vmem %s23_s14, 64  ;;  %s468_s16 = scalar_lea.vmem %s23_s14, 128 }
  0x14   :  { %p465_p5 = scmp.ne.s32.totalorder %s23_s14, %s464_s15  ;;  %p469_p6 = scmp.lt.s32.totalorder %s23_s14, %s23_s14 }
  0x15   :  { %p470_p7 = scmp.lt.s32.totalorder %s468_s16, %s464_s15 }
  0x17   :  { %p471_p8 = por %p470_p7, %p469_p6 }
  0x19   :  { %p472_p9 = pnand %p471_p8, %p465_p5 }
  0x1b   :  { %475 = shalt.err (!%p472_p9)
}
  0x1c   :  { %s504_s17 = smov 64   ;;  %s505_s18 = smov 4  }
  0x1d   :  { %28 = dma.hbm_to_vmem [thread:$0]  %s592_s0, 64, %s23_s14, [#allocation4], %s504_s17, %s504_s17, %s505_s18  }
  0x1e   :  { %s506_s21 = smov [#allocation7]  }
  0x1f   :  { %s48_s22 = sshll.u32 %s506_s21, 4  ;;  %s49_s22 = int_to_ptr.vmem [resolvable:$true] %s48_s22 }
  0x20   :  { %s484_s1 = scalar_lea.vmem %s49_s22, 1024  ;;  %p489_p11 = scmp.lt.s32.totalorder %s49_s22, %s49_s22 }
  0x21   :  { %p485_p10 = scmp.ne.s32.totalorder %s49_s22, %s484_s1  ;;  %p490_p12 = scmp.lt.s32.totalorder %s484_s1, %s484_s1 }
  0x23   :  { %p491_p13 = por %p490_p12, %p489_p11 }
  0x25   :  { %p492_p0 = pnand %p491_p13, %p485_p10 }
  0x27   :  { %495 = shalt.err (!%p492_p0)
}
  0x28   :  { %54 = dma.hbm_to_vmem [thread:$0]  %s595_s3, 1024, %s49_s22, [#allocation6], %s504_s17, %s504_s17, %s505_s18  }
  0x29   :  { %496 = dma.done.wait [#allocation4], 128  }
  0x2a   :  { %497 = vsyncadd [#allocation4], 4294967168 }
  0x2b   :  { %498 = dma.done.wait [#allocation6], 1280  }
  0x2c   :  { %499 = vsyncadd [#allocation6], 4294966016  ;;  %v507_v1 = vmov 0   ;;  %v417_v2 = vld [vmem:[#allocation5 + $0x4] ss:$8 sps:$4 sm:$0xff]   ;;  %v568_v4 = vld [vmem:[#allocation3] sm:$0xff]  ;;  %v79_v14 = vlaneseq }
  0x2d   :  { %135 = vmatprep.mubr.bf16.mxu0 %v507_v1  ;;  %v419_v3 = vld [vmem:[#allocation5] ss:$8 sps:$4 sm:$0xff]   ;;  %vm99_vm0 = vcmask 130048   ;;  %117 = vmatprep.subr.bf16.mxu0 %v417_v2  ;;  %v74_v5 = vpack.c.bf16 %v568_v4, %v568_v4  ;;  %v508_v7 = vmov 0.0   ;;  %v422_v9 = vld [vmem:[#allocation7 + $0x28] sm:$0xff]   ;;  %v423_v10 = vld [vmem:[#allocation7 + $0x20] sm:$0xff]  }
  0x2e   :  { %118 = vmatpush1.bf16.msra.mxu0 %v419_v3  ;;  %v420_v6 = vld [vmem:[#allocation7 + $0x38] sm:$0xff]   ;;  %386 = vmatprep.subr.bf16.mxu1 %v508_v7  ;;  %v421_v8 = vld [vmem:[#allocation7 + $0x30] sm:$0xff]   ;;  %v426_v13 = vld [vmem:[#allocation7 + $0x8] sm:$0xff]   ;;  %v80_v15 = vshrl.u32 %v79_v14, 7  ;;  %vm509_vm1 = vmmov 0   ;;  %s510_s25 = smov 112  }
  0x2f   :  { %387 = vmatpush3.bf16.msra.mxu1 %v420_v6  ;;  %v424_v11 = vld [vmem:[#allocation7 + $0x18] sm:$0xff]   ;;  %v425_v12 = vld [vmem:[#allocation7 + $0x10] sm:$0xff]   ;;  %v427_v17 = vld [vmem:[#allocation7] sm:$0xff]   ;;  %402 = vmatprep.mubr.msk.bf16.mxu1 %vm509_vm1, %v508_v7  ;;  %vm189_vm2 = vcmask 916480   ;;  %vm317_vm3 = vcmask 7168  }
  0x30   :  { %388 = vmatprep.subr.bf16.mxu1 %v508_v7  ;;  %v81_v16 = vsub.s32 0, %v80_v15  ;;  %v77_v18 = vld [vmem:[%s594_s2] sm:$0x3]  ;;  %v85_v19 = vsub.s32 1, %v80_v15 }
  0x31   :  { %364 = vmatmul.mubr.msk.bf16.vlgmr.msra.gmra.mxu0 %vm99_vm0, %v74_v5  ;;  %v375_v44 = vld [vmem:[%s598_s6] ss:$0 sm:$0xff] }
  0x32   :  { %v82_v20 = vrot.slane %v77_v18, %v81_v16  ;;  %v86_v21 = vrot.slane %v77_v18, %v85_v19  ;;  %v365_v46 = vld [vmem:[%s596_s4] ss:$0 sm:$0xff] }
  0x33   :  { %389 = vmatpush3.bf16.msra.mxu1 %v421_v8  ;;  %v374_v52 = vld [vmem:[%s597_s5] ss:$0 sm:$0xff] }
  0x34   :  { %390 = vmatprep.subr.bf16.mxu1 %v508_v7  ;;  %v376_v58 = vld [vmem:[#allocation2] ss:$0 sm:$0xff] }
  0x37   :  { %391 = vmatpush3.bf16.msra.mxu1 %v422_v9 }
  0x38   :  { %392 = vmatprep.subr.bf16.mxu1 %v508_v7 }
  0x3b   :  { %393 = vmatpush3.bf16.msra.mxu1 %v423_v10 }
  0x3c   :  { %394 = vmatprep.subr.bf16.mxu1 %v508_v7 }
  0x3f   :  { %395 = vmatpush3.bf16.msra.mxu1 %v424_v11 }
  0x40   :  { %396 = vmatprep.subr.bf16.mxu1 %v508_v7 }
  0x43   :  { %397 = vmatpush3.bf16.msra.mxu1 %v425_v12 }
  0x44   :  { %398 = vmatprep.subr.bf16.mxu1 %v508_v7 }
  0x47   :  { %399 = vmatpush3.bf16.msra.mxu1 %v426_v13 }
  0x48   :  { %400 = vmatprep.subr.bf16.mxu1 %v508_v7 }
  0x4b   :  { %401 = vmatpush3.bf16.msra.mxu1 %v427_v17 }
  0xf1   :  { %v137_v22 = vpop.f32.mrf.mxu0 }
  0xf2   :  { %v138_v23 = vadd.f32 %v137_v22, %v82_v20 }
  0xf3   :  { %v139_v24 = vpop.f32.mrf.mxu0 }
  0xf4   :  { %v140_v25 = vadd.f32 %v139_v24, %v86_v21  ;;  %v146_v26 = vsel %vm99_vm0, %v138_v23, -inf  ;;  %v144_v27 = vmax.f32 %v138_v23, 0.0 }
  0xf5   :  { %v141_v28 = vpop.f32.mrf.mxu0  ;;  %147 = vmax.xlane.f32.xlu1 %v146_v26 }
  0xf6   :  { %v145_v29 = vmax.f32 %v140_v25, 0.0  ;;  %v158_v30 = vpack.c.bf16 %v144_v27, %v144_v27 }
  0xf7   :  { %v142_v31 = vpop.f32.mrf.mxu0 }
  0xf8   :  { %185 = vrot.lane.b32.xlu0 %v158_v30, %s510_s25  ;;  %v159_v32 = vpack.c.bf16 %v145_v29, %v145_v29 }
  0xfc   :  { %187 = vrot.lane.b32.xlu0 %v159_v32, %s510_s25 }
 0x16a   :  { %v186_v33 = vpop.permute.xlu0 %185 }
 0x16e   :  { %v188_v34 = vpop.permute.xlu0 %187 }
 0x16f   :  { %v190_v35 = vsel %vm189_vm2, %v186_v33, %v188_v34 }
 0x170   :  { %403 = vmatmul.mubr.bf16.vlgmr.msra.gmra.mxu1 %v190_v35 }
 0x17e   :  { %v148_v36 = vpop.xlane.xlu1 %147 }
 0x17f   :  { %v149_v37 = vsub.f32 %v138_v23, %v148_v36 }
 0x181   :  { %v150_v38 = vmul.f32 1.442695, %v149_v37 }
 0x183   :  { %428 = vpow2.f32 %v150_v38 }
 0x190   :  { %v429_v39 = vpop.eup %428 }
 0x191   :  { %v152_v40 = vsel %vm99_vm0, %v429_v39, 0.0 }
 0x192   :  { %153 = vadd.xlane.f32.xlu1 %v152_v40 }
 0x21b   :  { %v154_v41 = vpop.xlane.xlu1 %153 }
 0x21c   :  { %430 = vrcp.f32 %v154_v41 }
 0x229   :  { %v431_v42 = vpop.eup %430 }
 0x22a   :  { %v156_v43 = vmul.f32 %v431_v42, %v429_v39 }
 0x22c   :  { %v157_v45 = vmul.f32 %v156_v43, %v568_v4 }
 0x22e   :  { %v298_v47 = vmul.f32 %v375_v44, %v157_v45 }
 0x230   :  { %v274_v48 = vpop.f32.mrf.mxu1  ;;  %v299_v49 = vsel %vm99_vm0, %v298_v47, 0.0 }
 0x231   :  { %v275_v50 = vadd.f32 %v365_v46, %v274_v48  ;;  %300 = vadd.xlane.f32.xlu1 %v299_v49 }
 0x232   :  { %v404_v51 = vpop.f32.mrf.mxu1 }
 0x233   :  { %v280_v53 = vmax.f32 %v275_v50, 0.0 }
 0x234   :  { %v277_v54 = vpop.f32.mrf.mxu1 }
 0x235   :  { %v288_v55 = vmul.f32 %v374_v52, %v280_v53 }
 0x236   :  { %v405_v56 = vpop.f32.mrf.mxu1 }
 0x237   :  { %289 = vadd.xlane.f32.xlu0 %v288_v55 }
 0x2ba   :  { %v301_v57 = vpop.xlane.xlu1 %300 }
 0x2c0   :  { %v290_v59 = vpop.xlane.xlu0 %289 }
 0x2c1   :  { %v302_v60 = vadd.f32 %v301_v57, %v290_v59 }
 0x2c3   :  { %v310_v61 = vadd.f32 %v376_v58, %v302_v60 }
 0x2c5   :  { %v311_v62 = vsub.f32 0.0, %v310_v61 }
 0x2c7   :  { %v312_v63 = vmul.f32 1.442695, %v311_v62 }
 0x2c9   :  { %432 = vpow2.f32 %v312_v63 }
 0x2d6   :  { %v433_v0 = vpop.eup %432 }
 0x2d7   :  { %v314_v1 = vadd.f32 1.0, %v433_v0 }
 0x2d9   :  { %434 = vrcp.f32 %v314_v1 }
 0x2e6   :  { %v435_v2 = vpop.eup %434 }
 0x2e7   :  { %318 = vst.msk [vmem:[#allocation8] sm:$0xff] %vm317_vm3, %v435_v2 }
 0x2ee   :  { %v337_v3 = vld [vmem:[#allocation8] sm:$0xf] }
 0x2ef   :  { %338 = vst [vmem:[%s600_s8] sm:$0xf] %v337_v3 }
 0x2f0   :  { %356 = vsyncpa [#allocation4], 1 }
 0x2f1   :  { %357 = vsyncpa [#allocation6], 1 }

</bundles_post_ra>
